<compile_context>
chip_gen: v6e
topology: v6e:2x2x1
jax: 0.10.0
libtpu: 0.0.40
codegen_flags: <defaults>
</compile_context>

<pallas_src>
import jax
import jax.numpy as jnp
import numpy as np
from jax import lax
from jax.experimental import pallas as pl
from jax.experimental.pallas import tpu as pltpu

FOCAL_LEVEL = 3                # fixed in CrossFocalModule.__init__
KERNEL_SIZES = (3, 5, 7)       # focal_factor * k + focal_window
_SQRT_2_OVER_PI = 0.7978845608028654


def _gelu(v):
    # tanh-form GELU (torch.nn.GELU(approximate='tanh')); one EUP tanh + a few VALU
    # ops.  Deviates from torch's exact-erf GELU by <= ~1e-3; swap in the erf form if
    # bit-fidelity against PyTorch is required.
    return 0.5 * v * (1.0 + jnp.tanh(_SQRT_2_OVER_PI * (v + 0.044715 * (v * v * v))))


# ----------------------------------------------------------------------------------
# pltpu.roll rotation-direction self-check.
# The depthwise conv relies on lane rolls; this tiny probe pins the rotation
# direction against jnp.roll so the kernel stays correct across jax versions.
# ----------------------------------------------------------------------------------
_ROLL_LIKE_JNP = None


def _roll_like_jnp():
    global _ROLL_LIKE_JNP
    if _ROLL_LIKE_JNP is not None:
        return _ROLL_LIKE_JNP

    x = jnp.arange(16 * 256, dtype=jnp.float32).reshape(16, 256)

    def probe(x_ref, o_ref):
        o_ref[...] = pltpu.roll(x_ref[...], 1, axis=1)

    out = np.asarray(
        pl.pallas_call(probe, out_shape=jax.ShapeDtypeStruct((16, 256), jnp.float32))(x))
    xh = np.asarray(x)
    if np.array_equal(out, np.roll(xh, 1, axis=1)):
        _ROLL_LIKE_JNP = True          # pltpu.roll(x, s) == jnp.roll(x, s)
    elif np.array_equal(out, np.roll(xh, -1, axis=1)):
        _ROLL_LIKE_JNP = False         # opposite convention
    else:
        raise RuntimeError(
            "pltpu.roll rotation convention matches neither jnp.roll nor its inverse; "
            "refusing to run the depthwise conv with an unknown roll sign.")
    return _ROLL_LIKE_JNP


def _pack_depthwise(w, H, W):
    """Fuse a depthwise (k, k, C) weight with its SAME-padding validity mask.

    Returns one dense per-tap operand wm of shape (k*k, C, H*W) with
      wm[t, c, p] = w[ky, kx, c] * valid(t, p)
    so the in-kernel focal loop is a single multiply-add per tap, with no lane-padded
    (C,1) weight columns and no sublane-padded (1,HW) masks.
    """
    k = int(w.shape[0])
    p = k // 2
    assert p < min(H, W), "roll+mask SAME padding requires k//2 < min(H, W)"
    y = np.arange(H)[:, None]
    x = np.arange(W)[None, :]
    msk = np.zeros((k * k, H * W), np.float32)
    for ky in range(k):
        for kx in range(k):
            dy, dx = ky - p, kx - p
            valid = (y + dy >= 0) & (y + dy < H) & (x + dx >= 0) & (x + dx < W)
            msk[ky * k + kx] = valid.reshape(H * W).astype(np.float32)
    w_flat = jnp.asarray(w).reshape(k * k, w.shape[2])              # (k*k, C)
    return w_flat[:, :, None] * jnp.asarray(msk)[:, None, :]        # (k*k, C, HW)


def cross_focal_forward(x, modulator_prev, params):
    """x, modulator_prev: (B, C, H, W) float32 (PyTorch NCHW). Returns NCHW outputs."""
    B, C, H, W = x.shape
    HW = H * W
    G = FOCAL_LEVEL + 1
    sgn = -1 if _roll_like_jnp() else 1       # lane-roll shift sign (see probe above)
    hp = lax.Precision.HIGHEST

    # NCHW -> channels-major lane-dense (B, C, H*W); free XLA reshape, no transpose.
    xt = x.reshape(B, C, HW)
    mt = modulator_prev.reshape(B, C, HW)

    # Fused per-tap (weight * SAME-padding mask) operands, one per focal level.
    wm = [_pack_depthwise(params[name], H, W) for name in ("dw3", "dw5", "dw7")]

    def kernel(x_ref, mp_ref, wf_ref, bf_ref,
               wm3_ref, wm5_ref, wm7_ref,
               whp_ref, why_ref, bh_ref, wp_ref, bp_ref,
               xout_ref, mod_ref):
        xb = x_ref[0]                                                # (C, HW) lane-dense

        # fused f (1x1 conv): one MXU pass producing [q ; ctx ; gates] on sublanes
        f = jnp.dot(wf_ref[...], xb,
                    preferred_element_type=jnp.float32, precision=hp) + bf_ref[...]
        q = f[0:C, :]                                                # (C, HW)
        ctx = f[C:2 * C, :]                                          # (C, HW)
        gts = f[2 * C:2 * C + G, :]                                  # (G, HW)

        # Focal: cascaded depthwise convs via lane rolls (shift = dy*W + dx).
        # Each tap is one lane roll + one multiply-add with the fused (C, HW) operand.
        cur = ctx
        ctx_all = None
        for lvl, (wm_ref, k) in enumerate(
                ((wm3_ref, 3), (wm5_ref, 5), (wm7_ref, 7))):
            pad = k // 2
            center = pad * k + pad
            acc = cur * wm_ref[center]        # center tap: zero shift, all-ones mask
            for ky in range(k):
                for kx in range(k):
                    t = ky * k + kx
                    if t == center:
                        continue
                    s = (ky - pad) * W + (kx - pad)
                    src = pltpu.roll(cur, (sgn * s) % HW, axis=1)
                    acc = acc + src * wm_ref[t]
            cur = _gelu(acc)
            term = cur * gts[lvl:lvl + 1, :]
            ctx_all = term if ctx_all is None else ctx_all + term
        ctx_global = _gelu(jnp.mean(cur, axis=1, keepdims=True))     # (C, 1)
        ctx_all = ctx_all + ctx_global * gts[FOCAL_LEVEL:FOCAL_LEVEL + 1, :]

        # h: 1x1 conv on concat([modulator_prev, cross_modulator]) -> split weight halves
        mod = (jnp.dot(whp_ref[...], mp_ref[0],
                       preferred_element_type=jnp.float32, precision=hp)
               + jnp.dot(why_ref[...], ctx_all,
                         preferred_element_type=jnp.float32, precision=hp)
               + bh_ref[...])

        # x_out = proj(q * modulator)
        xo = jnp.dot(wp_ref[...], q * mod,
                     preferred_element_type=jnp.float32, precision=hp) + bp_ref[...]

        xout_ref[0] = xo                                             # lane-dense stores
        mod_ref[0] = mod

    act_spec = pl.BlockSpec((1, C, HW), lambda b: (b, 0, 0))

    def full(*shape):
        # Grid-invariant operand (constant index map).  For production sizes mark these
        # pipeline_mode=pl.Buffered(1) to avoid double-buffering constant blocks.
        n = len(shape)
        return pl.BlockSpec(shape, lambda b, n=n: (0,) * n)

    grid_spec = pltpu.PrefetchScalarGridSpec(
        num_scalar_prefetch=0,
        grid=(B,),
        in_specs=[
            act_spec, act_spec,                       # x, modulator_prev
            full(2 * C + G, C), full(2 * C + G, 1),   # fused f weight / bias
            full(9, C, HW),                           # level-0 fused dw weight*mask
            full(25, C, HW),                          # level-1
            full(49, C, HW),                          # level-2
            full(C, C), full(C, C), full(C, 1),       # h (prev half, y half, bias)
            full(C, C), full(C, 1),                   # proj
        ],
        out_specs=[act_spec, act_spec],
    )
    out_shape = (jax.ShapeDtypeStruct((B, C, HW), jnp.float32),
                 jax.ShapeDtypeStruct((B, C, HW), jnp.float32))
    fn = pl.pallas_call(
        kernel,
        out_shape=out_shape,
        grid_spec=grid_spec,
        compiler_params=pltpu.CompilerParams(dimension_semantics=("parallel",)),
    )
    x_out, mod = fn(xt, mt,
                    params["wf"], params["bf"],
                    wm[0], wm[1], wm[2],
                    params["whp"], params["why"], params["bh"],
                    params["wp"], params["bp"])
    return x_out.reshape(B, C, H, W), mod.reshape(B, C, H, W)


def reference_forward(x, mprev, p):
    """Pure-JAX NCHW reference with identical math (checks the Pallas plumbing)."""
    B, C, H, W = x.shape
    G = FOCAL_LEVEL + 1
    hp = lax.Precision.HIGHEST
    xf = x.reshape(B, C, H * W)
    f = jnp.einsum("oc,bcn->bon", p["wf"], xf, precision=hp) + p["bf"][None]
    q = f[:, :C]
    ctx = f[:, C:2 * C].reshape(B, C, H, W)
    gts = f[:, 2 * C:].reshape(B, G, H, W)

    def dwconv(a, w, k):
        pd = k // 2
        ap = jnp.pad(a, ((0, 0), (0, 0), (pd, pd), (pd, pd)))
        acc = jnp.zeros_like(a)
        for ky in range(k):
            for kx in range(k):
                acc = acc + ap[:, :, ky:ky + H, kx:kx + W] * w[ky, kx][None, :, None, None]
        return acc

    cur = ctx
    ctx_all = jnp.zeros_like(ctx)
    for lvl, (w, k) in enumerate(((p["dw3"], 3), (p["dw5"], 5), (p["dw7"], 7))):
        cur = _gelu(dwconv(cur, w, k))
        ctx_all = ctx_all + cur * gts[:, lvl:lvl + 1]
    ctx_global = _gelu(jnp.mean(cur, axis=(2, 3), keepdims=True))
    ctx_all = ctx_all + ctx_global * gts[:, FOCAL_LEVEL:FOCAL_LEVEL + 1]

    yf = ctx_all.reshape(B, C, H * W)
    mpf = mprev.reshape(B, C, H * W)
    mod = (jnp.einsum("oc,bcn->bon", p["whp"], mpf, precision=hp)
           + jnp.einsum("oc,bcn->bon", p["why"], yf, precision=hp) + p["bh"][None])
    xo = jnp.einsum("oc,bcn->bon", p["wp"], q * mod, precision=hp) + p["bp"][None]
    return xo.reshape(B, C, H, W), mod.reshape(B, C, H, W)


def init_params(key, C):
    """Weights in the channels-major (out, in) orientation used by the kernel.

    Mapping to torch: f.weight(2C+G,C,1,1)->wf, h.weight(C,2C,1,1)->[whp|why] halves,
    proj.weight->wp, focal_layers[l][0].weight(C,1,k,k) -> (k,k,C) dw tensors.
    """
    ks = jax.random.split(key, 10)
    G = FOCAL_LEVEL + 1
    s = 1.0 / np.sqrt(C)

    def mat(k, shape, scale):
        return jax.random.normal(k, shape, jnp.float32) * scale

    return dict(
        wf=mat(ks[0], (2 * C + G, C), s),        # fused [q ; ctx ; gates] projection
        bf=mat(ks[1], (2 * C + G, 1), 0.02),
        dw3=mat(ks[2], (3, 3, C), 1.0 / 9.0),
        dw5=mat(ks[3], (5, 5, C), 1.0 / 25.0),
        dw7=mat(ks[4], (7, 7, C), 1.0 / 49.0),
        whp=mat(ks[5], (C, C), s),               # h weight half applied to modulator_prev
        why=mat(ks[6], (C, C), s),               # h weight half applied to cross_modulator
        bh=mat(ks[7], (C, 1), 0.02),
        wp=mat(ks[8], (C, C), s),
        bp=mat(ks[9], (C, 1), 0.02),
    )


if __name__ == "__main__":
    key = jax.random.PRNGKey(0)
    B, C, H, W = 2, 16, 16, 16
    kx, km, kp = jax.random.split(key, 3)

    # PyTorch NCHW inputs; the kernel consumes them directly (flatten spatial to lanes).
    x = jax.random.normal(kx, (B, C, H, W), jnp.float32)
    mprev = jax.random.normal(km, (B, C, H, W), jnp.float32)
    params = init_params(kp, C)

    x_out, modulator = cross_focal_forward(x, mprev, params)
    jax.block_until_ready((x_out, modulator))

    ref_out, ref_mod = reference_forward(x, mprev, params)
    np.testing.assert_allclose(np.asarray(x_out), np.asarray(ref_out), rtol=2e-3, atol=2e-3)
    np.testing.assert_allclose(np.asarray(modulator), np.asarray(ref_mod), rtol=2e-3, atol=2e-3)

    print("KERNEL_OK")
</pallas_src>

<mosaic_0001>
module attributes {stable_mosaic.version = 11 : i64} {
  func.func @probe(%arg0: memref<16x256xf32, #tpu.memory_space<vmem>>, %arg1: memref<16x256xf32, #tpu.memory_space<vmem>>) attributes {dimension_semantics = [], scalar_prefetch = 0 : i64, scratch_operands = 0 : i64, tpu.core_type = #tpu.core_type<tc>} {
    %c0 = arith.constant 0 : index
    %c0_0 = arith.constant 0 : index
    %0 = vector.load %arg0[%c0, %c0_0] : memref<16x256xf32, #tpu.memory_space<vmem>>, vector<16x256xf32>
    %c1_i32 = arith.constant 1 : i32
    %1 = tpu.dynamic_rotate %0 by %c1_i32 dim 1 : vector<16x256xf32>, i32 -> vector<16x256xf32>
    %c0_1 = arith.constant 0 : index
    %c0_2 = arith.constant 0 : index
    %2 = vector.load %arg1[%c0_1, %c0_2] : memref<16x256xf32, #tpu.memory_space<vmem>>, vector<16x256xf32>
    tpu.vector_store %arg1[%c0_1, %c0_2], %1 {strides = array<i32>} : memref<16x256xf32, #tpu.memory_space<vmem>>, vector<16x256xf32>,
    return
  }
}

</mosaic_0001>

<bundles_post_ra>
// kernel: tpu_custom_call.1
= control target key start
LH: loop header
LB: loop body
LE: loop exit
PB: predicated region body
PF: predicated region fallthrough
CT: control target
= control target key end

     0   :  { %6 = vsyncpa [#allocation3], 0  ;;  %s139_s0 = inlined_call_operand.hbm [shape: f32[16,256], index: 0, kind: input, shape index: {}]   ;;  %s140_s1 = inlined_call_operand.hbm [shape: f32[16,256], index: 1, kind: output, shape index: {}]  }
   0x1   :  { %7 = vsyncpa [#allocation4], 0  ;;  %s112_s6 = smov [#allocation2]  }
   0x2   :  { %s13_s7 = sshll.u32 %s112_s6, 4  ;;  %s14_s7 = int_to_ptr.vmem [resolvable:$true] %s13_s7 }
   0x3   :  { %s76_s8 = scalar_lea.vmem %s14_s7, 512  ;;  %p81_p1 = scmp.lt.s32.totalorder %s14_s7, %s14_s7 }
   0x4   :  { %p77_p0 = scmp.ne.s32.totalorder %s14_s7, %s76_s8  ;;  %p82_p2 = scmp.lt.s32.totalorder %s76_s8, %s76_s8 }
   0x6   :  { %p83_p3 = por %p82_p2, %p81_p1 }
   0x8   :  { %p84_p4 = pnand %p83_p3, %p77_p0 }
   0xa   :  { %87 = shalt.err (!%p84_p4)
}
   0xb   :  { %s113_s9 = smov 256   ;;  %s114_s10 = smov 16  }
   0xc   :  { %19 = dma.hbm_to_vmem [thread:$0]  %s139_s0, 512, %s14_s7, [#allocation3], %s113_s9, %s113_s9, %s114_s10  }
   0xd   :  { %108 = dma.done.wait [#allocation3], 512  }
   0xe   :  { %109 = vsyncadd [#allocation3], 4294966784  ;;  %v24_v0 = vld [vmem:[#allocation2 + $0x8] sm:$0xff]  ;;  %v23_v1 = vld [vmem:[#allocation2] sm:$0xff]  ;;  %s115_s13 = smov 1   ;;  %v35_v4 = vlaneseq  ;;  %s116_s14 = smov [#allocation5]  }
   0xf   :  { %31 = vrot.lane.b32.xlu1 %v24_v0, %s115_s13  ;;  %27 = vrot.lane.b32.xlu0 %v23_v1, %s115_s13  ;;  %v26_v2 = vld [vmem:[#allocation2 + $0x18] sm:$0xff]  ;;  %v25_v3 = vld [vmem:[#allocation2 + $0x10] sm:$0xff]  ;;  %s51_s0 = sshll.u32 %s116_s14, 4  ;;  %s52_s0 = int_to_ptr.vmem [resolvable:$true] %s51_s0 }
  0x10   :  { %v36_v5 = vand.u32 127, %v35_v4  ;;  %s88_s15 = scalar_lea.vmem %s52_s0, 512  ;;  %p93_p6 = scmp.lt.s32.totalorder %s52_s0, %s52_s0 }
  0x11   :  { %p89_p5 = scmp.ne.s32.totalorder %s52_s0, %s88_s15  ;;  %p94_p7 = scmp.lt.s32.totalorder %s88_s15, %s88_s15 }
  0x12   :  { %vm37_vm0 = vcmp.lt.s32.totalorder %v36_v5, 1 }
  0x13   :  { %33 = vrot.lane.b32.xlu1 %v26_v2, %s115_s13  ;;  %29 = vrot.lane.b32.xlu0 %v25_v3, %s115_s13  ;;  %p95_p8 = por %p94_p7, %p93_p6 }
  0x15   :  { %p96_p9 = pnand %p95_p8, %p89_p5 }
  0x81   :  { %v32_v6 = vpop.permute.xlu1 %31  ;;  %v28_v7 = vpop.permute.xlu0 %27 }
  0x82   :  { %v38_v8 = vsel %vm37_vm0, %v28_v7, %v32_v6  ;;  %v40_v9 = vsel %vm37_vm0, %v32_v6, %v28_v7 }
  0x83   :  { %42 = vst [vmem:[#allocation5] sm:$0xff] %v40_v9  ;;  %43 = vst [vmem:[#allocation5 + $0x8] sm:$0xff] %v38_v8 }
  0x85   :  { %v34_v10 = vpop.permute.xlu1 %33  ;;  %v30_v11 = vpop.permute.xlu0 %29 }
  0x86   :  { %v39_v12 = vsel %vm37_vm0, %v30_v11, %v34_v10  ;;  %v41_v13 = vsel %vm37_vm0, %v34_v10, %v30_v11 }
  0x87   :  { %44 = vst [vmem:[#allocation5 + $0x10] sm:$0xff] %v41_v13  ;;  %45 = vst [vmem:[#allocation5 + $0x18] sm:$0xff] %v39_v12 }
  0x88   :  { %99 = shalt.err (!%p96_p9)
}
  0x89   :  { %57 = dma.vmem_to_hbm [thread:$0]  %s52_s0, 512, %s140_s1, [#allocation4], %s113_s9, %s113_s9, %s114_s10  }
  0x8a   :  { %110 = dma.done.wait [#allocation4], 512  }
  0x8b   :  { %111 = vsyncadd [#allocation4], 4294966784 }
  0x8c   :  { %61 = vsyncpa [#allocation3], 1 }
  0x8d   :  { %62 = vsyncpa [#allocation4], 1 }

</bundles_post_ra>
